<compile_context>
chip_gen: v6e
topology: v6e:2x2x1
jax: 0.10.0
libtpu: 0.0.40
codegen_flags: <defaults>
</compile_context>

<pallas_src>
import functools

import numpy as np
import jax
import jax.numpy as jnp
from jax.experimental import pallas as pl
from jax.experimental.pallas import tpu as pltpu


# ---------------------------------------------------------------------------
# One-time (parameter-load-time) packing: Conv1d -> block-banded matmul weight
# ---------------------------------------------------------------------------
def pack_conv1d_params_banded(weight, bias, *, seq_len, padding=1):
    """Repack PyTorch Conv1d parameters for the lane-dense kernel.

    weight: (C_out, C_in, K)   PyTorch layout
    bias:   (C_out,)
    Returns:
      w_banded: (T*C_in, T*C_out)  with
                w_banded[t_in*C_in + ci, t_out*C_out + co] = weight[co, ci, k]
                where k = t_in - t_out + padding (zero outside the band),
      b_row:    (1, T*C_out)       bias tiled over time.
    Doing this once at load time keeps all transposes / reshapes / padding
    logic out of the per-call forward path and out of the kernel body.
    """
    C_out, C_in, K = weight.shape
    T = seq_len
    w_np = np.asarray(weight, dtype=np.float32)           # (C_out, C_in, K)
    W = np.zeros((T * C_in, T * C_out), dtype=np.float32)
    for t_out in range(T):
        for k in range(K):
            t_in = t_out + k - padding
            if 0 <= t_in < T:                              # zero padding rows
                W[t_in * C_in:(t_in + 1) * C_in,
                  t_out * C_out:(t_out + 1) * C_out] = w_np[:, :, k].T
    b_row = np.tile(np.asarray(bias, dtype=np.float32), T).reshape(1, T * C_out)
    return jnp.asarray(W), jnp.asarray(b_row)


# ---------------------------------------------------------------------------
# Kernel: one lane-dense matmul + bias + LeakyReLU, unmasked store
# ---------------------------------------------------------------------------
def _make_kernel(negative_slope, use_bf16_operands):
    def kernel(x_ref, w_ref, b_ref, o_ref):
        # x_ref: (block_b, T*C)   flattened (time*channel on the lane axis)
        # w_ref: (T*C, T*C)       block-banded packed weight
        # b_ref: (1,  T*C)        bias tiled over time
        # o_ref: (block_b, T*C)
        x = x_ref[...]
        w = w_ref[...]
        if use_bf16_operands:
            # v6e/v7x MXUs are bf16-native; only worth it once rows/lanes are
            # large. Accumulation stays f32 via preferred_element_type.
            x = x.astype(jnp.bfloat16)
            w = w.astype(jnp.bfloat16)
        acc = jnp.dot(x, w, preferred_element_type=jnp.float32)
        acc = acc + b_ref[...]
        # LeakyReLU (PyTorch default negative_slope=0.01).
        acc = jnp.where(acc >= 0, acc, negative_slope * acc)
        o_ref[...] = acc.astype(o_ref.dtype)

    return kernel


# ---------------------------------------------------------------------------
# Batch-tile sizing: VMEM cap (v5e/v7x) + optional v7x 2-TensorCore split
# ---------------------------------------------------------------------------
def _choose_block_b(B, TC, itemsize):
    # Per grid step the pipeline double-buffers the (block_b, TC) input and
    # output tiles -> ~4 * block_b * TC * itemsize bytes. Stay well under the
    # smallest default scoped-VMEM budget (16 MiB on v5e; v7x physical VMEM is
    # 64 MiB) while leaving room for the resident banded weight.
    vmem_budget = 8 << 20
    rows_cap = max(8, vmem_budget // max(1, 4 * TC * itemsize))

    block_b = B
    try:
        kind = jax.devices()[0].device_kind.lower()
    except Exception:
        kind = ""
    # v7x has 2 TensorCores per chip: split the (parallel) batch axis across
    # them once there is enough work to amortize the extra pipeline step.
    if "v7" in kind and B % 16 == 0 and B >= 512:
        block_b = B // 2

    if block_b > rows_cap:
        blk = (rows_cap // 8) * 8
        while blk >= 8 and B % blk:
            blk -= 8
        block_b = blk if (blk >= 8 and B % blk == 0) else B
    return block_b


# ---------------------------------------------------------------------------
# Forward wrapper (module semantics: input/output are (B, T, C) channels-last)
# ---------------------------------------------------------------------------
def temporal_1d_conv_encoder(x, w_banded, b_row, *, block_b=None,
                             negative_slope=0.01, use_bf16_operands=False):
    """x: (B, T, C). w_banded/b_row: outputs of pack_conv1d_params_banded.
    Returns (B, T, C). Eval-mode forward (Dropout = identity)."""
    B, T, C = x.shape
    TC = T * C
    assert w_banded.shape == (TC, TC), w_banded.shape
    assert b_row.shape == (1, TC), b_row.shape
    # Banded-weight formulation is meant for small T*C (grows as (T*C)^2).
    assert TC * TC * 4 <= (8 << 20), "T*C too large for the banded path"

    if block_b is None:
        block_b = _choose_block_b(B, TC, jnp.dtype(x.dtype).itemsize)
    assert B % block_b == 0
    assert block_b == B or block_b % 8 == 0
    grid = (B // block_b,)

    # Free row-major metadata reshape: (B, T, C) -> (B, T*C); time*channel now
    # sits on the lane axis (lane-dense loads, unmasked lane-dense stores).
    x2d = x.reshape(B, TC)

    kernel = _make_kernel(negative_slope, use_bf16_operands)

    y2d = pl.pallas_call(
        kernel,
        out_shape=jax.ShapeDtypeStruct((B, TC), x.dtype),
        grid=grid,
        in_specs=[
            pl.BlockSpec((block_b, TC), lambda i: (i, 0)),
            pl.BlockSpec((TC, TC), lambda i: (0, 0)),
            pl.BlockSpec((1, TC), lambda i: (0, 0)),
        ],
        out_specs=pl.BlockSpec((block_b, TC), lambda i: (i, 0)),
        compiler_params=pltpu.CompilerParams(
            dimension_semantics=("parallel",),
        ),
    )(x2d, w_banded, b_row)

    return y2d.reshape(B, T, C)


# ---------------------------------------------------------------------------
# Pure-JAX reference matching PyTorch semantics (eval mode)
# ---------------------------------------------------------------------------
def reference_forward(x, weight, bias, *, padding=1, negative_slope=0.01):
    x_ncw = jnp.transpose(x, (0, 2, 1))
    y = jax.lax.conv_general_dilated(
        x_ncw, weight,
        window_strides=(1,),
        padding=[(padding, padding)],
        dimension_numbers=("NCH", "OIH", "NCH"),
    )
    y = y + bias[None, :, None]
    y = jnp.where(y >= 0, y, negative_slope * y)
    return jnp.transpose(y, (0, 2, 1))


if __name__ == "__main__":
    # model_params: input_feature_len = 8 (channels), kernel_size = 3, pad = 1
    B, T, C, K, PAD = 2, 16, 8, 3, 1

    key = jax.random.PRNGKey(0)
    kx, kw, kb = jax.random.split(key, 3)

    x = jax.random.normal(kx, (B, T, C), dtype=jnp.float32)
    fan_in = C * K
    bound = 1.0 / (fan_in ** 0.5)
    weight = jax.random.uniform(kw, (C, C, K), minval=-bound, maxval=bound,
                                dtype=jnp.float32)   # PyTorch (O, I, K) layout
    bias = jax.random.uniform(kb, (C,), minval=-bound, maxval=bound,
                              dtype=jnp.float32)

    # One-time parameter packing (load-time, not per forward call).
    w_banded, b_row = pack_conv1d_params_banded(weight, bias,
                                                seq_len=T, padding=PAD)

    out = temporal_1d_conv_encoder(x, w_banded, b_row)
    out = jax.block_until_ready(out)

    ref = reference_forward(x, weight, bias, padding=PAD)
    assert out.shape == (B, T, C), out.shape
    assert jnp.allclose(out, ref, atol=1e-5, rtol=1e-5), "mismatch vs reference"

    print("KERNEL_OK")
</pallas_src>

<mosaic_0001>
module attributes {stable_mosaic.version = 11 : i64} {
  func.func @kernel(%arg0: i32, %arg1: memref<2x128xf32, #tpu.memory_space<vmem>>, %arg2: memref<128x128xf32, #tpu.memory_space<vmem>>, %arg3: memref<1x128xf32, #tpu.memory_space<vmem>>, %arg4: memref<2x128xf32, #tpu.memory_space<vmem>>) attributes {dimension_semantics = [#tpu.dimension_semantics<parallel>], iteration_bounds = array<i64: 1>, scalar_prefetch = 0 : i64, scratch_operands = 0 : i64, tpu.core_type = #tpu.core_type<tc>, window_params = [{transform_indices = @transform_0, window_bounds = array<i64: 2, 128>}, {pipeline_mode = #tpu.pipeline_mode<synchronous>, transform_indices = @transform_1, window_bounds = array<i64: 128, 128>}, {pipeline_mode = #tpu.pipeline_mode<synchronous>, transform_indices = @transform_2, window_bounds = array<i64: 1, 128>}, {transform_indices = @transform_3, window_bounds = array<i64: 2, 128>}]} {
    %c0 = arith.constant 0 : index
    %c0_0 = arith.constant 0 : index
    %0 = vector.load %arg1[%c0, %c0_0] : memref<2x128xf32, #tpu.memory_space<vmem>>, vector<2x128xf32>
    %c0_1 = arith.constant 0 : index
    %c0_2 = arith.constant 0 : index
    %1 = vector.load %arg2[%c0_1, %c0_2] : memref<128x128xf32, #tpu.memory_space<vmem>>, vector<128x128xf32>
    %cst = arith.constant dense<0.000000e+00> : vector<2x128xf32>
    %2 = tpu.matmul %0, %1, %cst {dimension_numbers = #tpu.dot_dimension_numbers<[1], [0], [0], [1], [0, 0, 1, 1], [], []>} : vector<2x128xf32>, vector<128x128xf32>, vector<2x128xf32> -> vector<2x128xf32>
    %c0_3 = arith.constant 0 : index
    %c0_4 = arith.constant 0 : index
    %3 = vector.load %arg3[%c0_3, %c0_4] : memref<1x128xf32, #tpu.memory_space<vmem>>, vector<1x128xf32>
    %4 = vector.broadcast %3 : vector<1x128xf32> to vector<2x128xf32>
    %5 = arith.addf %2, %4 : vector<2x128xf32>
    %cst_5 = arith.constant 0.000000e+00 : f32
    %6 = vector.broadcast %cst_5 : f32 to vector<2x128xf32>
    %7 = arith.cmpf oge, %5, %6 : vector<2x128xf32>
    %cst_6 = arith.constant 0.00999999977 : f32
    %8 = vector.broadcast %cst_6 : f32 to vector<2x128xf32>
    %9 = arith.mulf %8, %5 : vector<2x128xf32>
    %10 = arith.select %7, %5, %9 : vector<2x128xi1>, vector<2x128xf32>
    %c0_7 = arith.constant 0 : index
    %c0_8 = arith.constant 0 : index
    %11 = vector.load %arg4[%c0_7, %c0_8] : memref<2x128xf32, #tpu.memory_space<vmem>>, vector<2x128xf32>
    tpu.vector_store %arg4[%c0_7, %c0_8], %10 {strides = array<i32>} : memref<2x128xf32, #tpu.memory_space<vmem>>, vector<2x128xf32>,
    return
  }
  func.func @transform_0(%arg0: i32) -> (i32, i32) {
    %c0_i32 = arith.constant 0 : i32
    %c0_i32_0 = arith.constant 0 : i32
    return %arg0, %c0_i32 : i32, i32
  }
  func.func @transform_1(%arg0: i32) -> (i32, i32) {
    %c0_i32 = arith.constant 0 : i32
    %c0_i32_0 = arith.constant 0 : i32
    %c0_i32_1 = arith.constant 0 : i32
    return %c0_i32, %c0_i32_0 : i32, i32
  }
  func.func @transform_2(%arg0: i32) -> (i32, i32) {
    %c0_i32 = arith.constant 0 : i32
    %c0_i32_0 = arith.constant 0 : i32
    %c0_i32_1 = arith.constant 0 : i32
    return %c0_i32, %c0_i32_0 : i32, i32
  }
  func.func @transform_3(%arg0: i32) -> (i32, i32) {
    %c0_i32 = arith.constant 0 : i32
    %c0_i32_0 = arith.constant 0 : i32
    return %arg0, %c0_i32 : i32, i32
  }
}

</mosaic_0001>

<bundles_post_ra>
// kernel: tpu_custom_call.1
= control target key start
LH: loop header
LB: loop body
LE: loop exit
PB: predicated region body
PF: predicated region fallthrough
CT: control target
= control target key end

     0   :  { %8 = vsyncpa [#allocation3], 0  ;;  %s320_s0 = inlined_call_operand.hbm [shape: f32[2,128], index: 0, kind: input, shape index: {}]   ;;  %s321_s1 = inlined_call_operand.hbm [shape: f32[128,128], index: 1, kind: input, shape index: {}]   ;;  %s322_s2 = inlined_call_operand.vmem [shape: f32[1,128], index: 2, kind: input, shape index: {}]   ;;  %s323_s3 = inlined_call_operand.hbm [shape: f32[2,128], index: 3, kind: output, shape index: {}]  }
   0x1   :  { %9 = vsyncpa [#allocation6], 0 }
   0x2   :  { %10 = vsyncpa [#allocation4], 0  ;;  %s281_s12 = smov [#allocation2]   ;;  %s282_s14 = smov [#allocation5]  }
   0x3   :  { %s17_s13 = sshll.u32 %s281_s12, 4  ;;  %s26_s15 = sshll.u32 %s282_s14, 4  ;;  %s18_s13 = int_to_ptr.vmem [resolvable:$true] %s17_s13  ;;  %s27_s15 = int_to_ptr.vmem [resolvable:$true] %s26_s15 }
   0x4   :  { %s223_s16 = scalar_lea.vmem %s18_s13, 32  ;;  %p228_p1 = scmp.lt.s32.totalorder %s18_s13, %s18_s13 }
   0x5   :  { %p224_p0 = scmp.ne.s32.totalorder %s18_s13, %s223_s16  ;;  %p229_p2 = scmp.lt.s32.totalorder %s223_s16, %s223_s16 }
   0x7   :  { %p230_p3 = por %p229_p2, %p228_p1 }
   0x9   :  { %p231_p4 = pnand %p230_p3, %p224_p0 }
   0xb   :  { %234 = shalt.err (!%p231_p4)
}
   0xc   :  { %20 = dma.hbm_to_vmem [thread:$0]  %s320_s0, 32, %s18_s13, [#allocation3]  }
   0xd   :  { %s243_s19 = scalar_lea.vmem %s27_s15, 2048  ;;  %p248_p6 = scmp.lt.s32.totalorder %s27_s15, %s27_s15 }
   0xe   :  { %p244_p5 = scmp.ne.s32.totalorder %s27_s15, %s243_s19  ;;  %p249_p7 = scmp.lt.s32.totalorder %s243_s19, %s243_s19 }
  0x10   :  { %p250_p8 = por %p249_p7, %p248_p6 }
  0x12   :  { %p251_p9 = pnand %p250_p8, %p244_p5 }
  0x14   :  { %254 = shalt.err (!%p251_p9)
}
  0x15   :  { %s283_s20 = smov 128   ;;  %s284_s21 = smov 8  }
  0x16   :  { %32 = dma.hbm_to_vmem [thread:$0]  %s321_s1, 2048, %s27_s15, [#allocation6], %s283_s20, %s283_s20, %s284_s21  }
  0x17   :  { %275 = dma.done.wait [#allocation3], 32  }
  0x18   :  { %276 = vsyncadd [#allocation3], 4294967264 }
  0x19   :  { %277 = dma.done.wait [#allocation6], 2048  }
  0x1a   :  { %278 = vsyncadd [#allocation6], 4294965248  ;;  %v285_v0 = vmov 0.0   ;;  %vm286_vm0 = vmmov 0   ;;  %v57_v1 = vld [vmem:[#allocation5 + $0x78] sm:$0xff]  ;;  %v56_v2 = vld [vmem:[#allocation5 + $0x70] sm:$0xff] }
  0x1b   :  { %173 = vmatprep.subr.mxu0 %v285_v0  ;;  %205 = vmatprep.mubr.msk.f32.mxu0 %vm286_vm0, %v285_v0  ;;  %v55_v3 = vld [vmem:[#allocation5 + $0x68] sm:$0xff]  ;;  %v54_v4 = vld [vmem:[#allocation5 + $0x60] sm:$0xff]  ;;  %v53_v5 = vld [vmem:[#allocation5 + $0x58] sm:$0xff]  ;;  %s287_s24 = smov [#allocation7]  }
  0x1c   :  { %174 = vmatpush3.msra.mxu0 %v57_v1  ;;  %v52_v6 = vld [vmem:[#allocation5 + $0x50] sm:$0xff]  ;;  %v51_v7 = vld [vmem:[#allocation5 + $0x48] sm:$0xff]  ;;  %v50_v8 = vld [vmem:[#allocation5 + $0x40] sm:$0xff]  ;;  %s145_s25 = sshll.u32 %s287_s24, 4  ;;  %s146_s25 = int_to_ptr.vmem [resolvable:$true] %s145_s25 }
  0x1d   :  { %175 = vmatprep.subr.mxu0 %v285_v0  ;;  %v49_v9 = vld [vmem:[#allocation5 + $0x38] sm:$0xff]  ;;  %v48_v10 = vld [vmem:[#allocation5 + $0x30] sm:$0xff]  ;;  %v47_v11 = vld [vmem:[#allocation5 + $0x28] sm:$0xff]  ;;  %s255_s26 = scalar_lea.vmem %s146_s25, 32  ;;  %p260_p11 = scmp.lt.s32.totalorder %s146_s25, %s146_s25 }
  0x1e   :  { %176 = vmatpush3.msra.mxu0 %v56_v2  ;;  %v46_v12 = vld [vmem:[#allocation5 + $0x20] sm:$0xff]  ;;  %v45_v13 = vld [vmem:[#allocation5 + $0x18] sm:$0xff]  ;;  %v44_v14 = vld [vmem:[#allocation5 + $0x10] sm:$0xff]  ;;  %p256_p10 = scmp.ne.s32.totalorder %s146_s25, %s255_s26  ;;  %p261_p12 = scmp.lt.s32.totalorder %s255_s26, %s255_s26 }
  0x1f   :  { %177 = vmatprep.subr.mxu0 %v285_v0  ;;  %v43_v15 = vld [vmem:[#allocation5 + $0x8] sm:$0xff]  ;;  %v42_v16 = vld [vmem:[#allocation5] sm:$0xff]  ;;  %v41_v17 = vld [vmem:[#allocation2] sm:$0x3] }
  0x20   :  { %178 = vmatpush3.msra.mxu0 %v55_v3  ;;  %v155_v18 = vld [vmem:[%s322_s2] ss:$0 sm:$0xff]  ;;  %p262_p13 = por %p261_p12, %p260_p11 }
  0x21   :  { %179 = vmatprep.subr.mxu0 %v285_v0 }
  0x22   :  { %180 = vmatpush3.msra.mxu0 %v54_v4  ;;  %p263_p0 = pnand %p262_p13, %p256_p10 }
  0x23   :  { %181 = vmatprep.subr.mxu0 %v285_v0 }
  0x24   :  { %182 = vmatpush3.msra.mxu0 %v53_v5 }
  0x25   :  { %183 = vmatprep.subr.mxu0 %v285_v0 }
  0x26   :  { %184 = vmatpush3.msra.mxu0 %v52_v6 }
  0x27   :  { %185 = vmatprep.subr.mxu0 %v285_v0 }
  0x28   :  { %186 = vmatpush3.msra.mxu0 %v51_v7 }
  0x29   :  { %187 = vmatprep.subr.mxu0 %v285_v0 }
  0x2a   :  { %188 = vmatpush3.msra.mxu0 %v50_v8 }
  0x2b   :  { %189 = vmatprep.subr.mxu0 %v285_v0 }
  0x2c   :  { %190 = vmatpush3.msra.mxu0 %v49_v9 }
  0x2d   :  { %191 = vmatprep.subr.mxu0 %v285_v0 }
  0x2e   :  { %192 = vmatpush3.msra.mxu0 %v48_v10 }
  0x2f   :  { %193 = vmatprep.subr.mxu0 %v285_v0 }
  0x30   :  { %194 = vmatpush3.msra.mxu0 %v47_v11 }
  0x31   :  { %195 = vmatprep.subr.mxu0 %v285_v0 }
  0x32   :  { %196 = vmatpush3.msra.mxu0 %v46_v12 }
  0x33   :  { %197 = vmatprep.subr.mxu0 %v285_v0 }
  0x34   :  { %198 = vmatpush3.msra.mxu0 %v45_v13 }
  0x35   :  { %199 = vmatprep.subr.mxu0 %v285_v0 }
  0x36   :  { %200 = vmatpush3.msra.mxu0 %v44_v14 }
  0x37   :  { %201 = vmatprep.subr.mxu0 %v285_v0 }
  0x38   :  { %202 = vmatpush3.msra.mxu0 %v43_v15 }
  0x39   :  { %203 = vmatprep.subr.mxu0 %v285_v0 }
  0x3a   :  { %204 = vmatpush3.msra.mxu0 %v42_v16 }
  0x3b   :  { %206 = vmatmul.mubr.f32.vlgmr.msra.gmra.mxu0 %v41_v17 }
  0xfb   :  { %v131_v19 = vpop.f32.mrf.mxu0 }
  0xfc   :  { %v132_v20 = vadd.f32 %v155_v18, %v131_v19 }
  0xfd   :  { %v207_v21 = vpop.f32.mrf.mxu0 }
  0xfe   :  { %v136_v22 = vmul.f32 0.01, %v132_v20  ;;  %vm135_vm1 = vcmp.ge.f32.partialorder %v132_v20, 0.0 }
 0x100   :  { %v137_v23 = vsel %vm135_vm1, %v132_v20, %v136_v22 }
 0x101   :  { %138 = vst [vmem:[#allocation7] sm:$0x3] %v137_v23 }
 0x102   :  { %266 = shalt.err (!%p263_p0)
}
 0x103   :  { %148 = dma.vmem_to_hbm [thread:$0]  %s146_s25, 32, %s323_s3, [#allocation4]  }
 0x104   :  { %279 = dma.done.wait [#allocation4], 32  }
 0x105   :  { %280 = vsyncadd [#allocation4], 4294967264 }
 0x106   :  { %152 = vsyncpa [#allocation3], 1 }
 0x107   :  { %153 = vsyncpa [#allocation6], 1 }
 0x108   :  { %154 = vsyncpa [#allocation4], 1 }

</bundles_post_ra>
